<compile_context>
chip_gen: v7x
topology: tpu7x:2x2x1
jax: 0.10.0
libtpu: 0.0.40
codegen_flags: <defaults>
</compile_context>

<pallas_src>
import jax
import jax.numpy as jnp
from jax import lax
from jax.experimental import pallas as pl
from jax.experimental.pallas import tpu as pltpu


def _soft_dot_attention_kernel(ctx_ref, h_ref, w_ref, wctx_ref, attn_ref):
    # ctx_ref : (BB, S, D_ctx)  context block (compute dtype, e.g. bf16)
    # h_ref   : (BB, D_h)       hidden-state block
    # w_ref   : (D_ctx, D_h)    linear_in weight (PyTorch nn.Linear layout)
    # wctx_ref: (BB, 1, D_ctx)  weighted-context output block
    # attn_ref: (BB, S)         attention-weight output block

    ctx = ctx_ref[...]                         # (BB, S, D_ctx)
    h = h_ref[...]                             # (BB, D_h)
    w = w_ref[...]                             # (D_ctx, D_h)

    # target = h @ W^T  -> (BB, D_ctx); M = BB fills the MXU, f32 accumulation.
    target = lax.dot_general(
        h, w, (((1,), (1,)), ((), ())),
        preferred_element_type=jnp.float32)

    ctx_f32 = ctx.astype(jnp.float32)

    # scores[b, s] = sum_d ctx[b, s, d] * target[b, d]
    # (VPU elementwise multiply + XLU lane reduce; no M=1 MXU matvec.)
    scores = jnp.sum(ctx_f32 * target[:, None, :], axis=-1)   # (BB, S)

    # TODO(synk): optional `mask` (masked_fill_ with -inf) not plumbed through;
    # the reference forward defaults to mask=None.

    # softmax over the sequence axis (PyTorch Softmax(dim=1) on [B, S]).
    m = jnp.max(scores, axis=-1, keepdims=True)
    p = jnp.exp(scores - m)
    denom = jnp.sum(p, axis=-1, keepdims=True)
    # approx=True -> EUP vrcp slot (idle here, essentially free); relative
    # error ~1e-3, accounted for in the test tolerances.
    attn = p * pl.reciprocal(denom, approx=True)               # (BB, S)

    # weighted[b, d] = sum_s attn[b, s] * ctx[b, s, d]
    # (VPU multiply + XLU sublane reduce.)
    weighted = jnp.sum(attn[:, :, None] * ctx_f32, axis=1)     # (BB, D_ctx)

    # NOTE: attn's last dim is S; for very small S this store is not lane-dense
    # (masked vst), but attn is tiny next to the context stream.
    attn_ref[...] = attn.astype(attn_ref.dtype)
    wctx_ref[...] = weighted[:, None, :].astype(wctx_ref.dtype)


def _choose_block_b(B, S, D_ctx, itemsize, block_b):
    """Pick a batch block: multiple of 8, sized so the double-buffered context
    stream stays within a conservative VMEM budget (fits v5e/v6e/v7x)."""
    if block_b is None:
        budget = 8 * 1024 * 1024                   # bytes for 2x ctx block
        per_row = max(1, S * D_ctx * itemsize)
        bb = budget // (2 * per_row)
        bb = min(512, max(8, (bb // 8) * 8))
    else:
        bb = max(8, (int(block_b) // 8) * 8)
    if bb >= B:
        bb = B                                     # full batch: always legal
        return bb, B
    b_pad = ((B + bb - 1) // bb) * bb
    return bb, b_pad


def soft_dot_attention(context, h, w, *, compute_dtype=jnp.bfloat16,
                       block_b=None):
    """context: [B, S, D_ctx], h: [B, D_h], w: [D_ctx, D_h] (Linear weight).

    Returns (weighted_ctx [B, 1, D_ctx], attn [B, S]) in context.dtype.
    """
    B, S, D_ctx = context.shape
    Bh, D_h = h.shape
    assert Bh == B and w.shape == (D_ctx, D_h)

    out_dtype = context.dtype
    cdt = context.dtype if compute_dtype is None else compute_dtype

    # Stream in the compute dtype (bf16 halves HBM traffic); accumulate in f32.
    ctx_c = context.astype(cdt)
    h_c = h.astype(cdt)
    w_c = w.astype(cdt)

    itemsize = jnp.dtype(cdt).itemsize
    bb, b_pad = _choose_block_b(B, S, D_ctx, itemsize, block_b)

    if b_pad != B:
        pad = b_pad - B
        ctx_c = jnp.pad(ctx_c, ((0, pad), (0, 0), (0, 0)))
        h_c = jnp.pad(h_c, ((0, pad), (0, 0)))

    grid = (b_pad // bb,)

    # VMEM budget: double-buffered inputs/outputs + in-kernel f32 intermediates.
    # Capped at 48 MiB so it fits v7x's 64 MiB physical VMEM with headroom.
    out_itemsize = jnp.dtype(out_dtype).itemsize
    blk_bytes = (
        2 * (bb * S * D_ctx * itemsize        # context stream (double buffer)
             + bb * D_h * itemsize            # h blocks
             + D_ctx * D_h * itemsize         # weight (same block every step)
             + bb * D_ctx * out_itemsize      # weighted-ctx out
             + bb * S * out_itemsize)         # attn out
        + 3 * bb * S * D_ctx * 4)             # f32 intermediates in the body
    vmem_limit = int(min(48 * 1024 * 1024, max(16 * 1024 * 1024, blk_bytes)))

    # TODO(synk): for very large D_ctx x D_h weights, hoist the projection to a
    # plain XLA GEMM (or tile W over D_h) instead of keeping W VMEM-resident.
    grid_spec = pltpu.PrefetchScalarGridSpec(
        num_scalar_prefetch=0,
        grid=grid,
        in_specs=[
            # one batch block of context per grid step
            pl.BlockSpec((bb, S, D_ctx), lambda i: (i, 0, 0)),
            # matching batch block of h
            pl.BlockSpec((bb, D_h), lambda i: (i, 0)),
            # full weight, same block every step
            pl.BlockSpec((D_ctx, D_h), lambda i: (0, 0)),
        ],
        out_specs=[
            pl.BlockSpec((bb, 1, D_ctx), lambda i: (i, 0, 0)),
            pl.BlockSpec((bb, S), lambda i: (i, 0)),
        ],
    )

    weighted_ctx, attn = pl.pallas_call(
        _soft_dot_attention_kernel,
        grid_spec=grid_spec,
        out_shape=(
            jax.ShapeDtypeStruct((b_pad, 1, D_ctx), out_dtype),
            jax.ShapeDtypeStruct((b_pad, S), out_dtype),
        ),
        compiler_params=pltpu.CompilerParams(
            dimension_semantics=("parallel",),   # batch blocks shard across TCs
            vmem_limit_bytes=vmem_limit),
    )(ctx_c, h_c, w_c)

    if b_pad != B:
        weighted_ctx = weighted_ctx[:B]
        attn = attn[:B]
    return weighted_ctx, attn


def soft_dot_attention_ref(context, h, w):
    """Pure-JAX reference mirroring the PyTorch forward (mask=None)."""
    target = h @ w.T                                   # (B, D_ctx)
    attn = jnp.einsum("bsd,bd->bs", context, target)   # (B, S)
    attn = jax.nn.softmax(attn, axis=1)
    weighted_ctx = jnp.einsum("bs,bsd->bd", attn, context)[:, None, :]
    return weighted_ctx, attn


if __name__ == "__main__":
    # Module shapes: dim_ctx (context feature dim), dim_h (hidden dim)
    B, S, DIM_CTX, DIM_H = 2, 8, 64, 32

    key = jax.random.PRNGKey(0)
    k_ctx, k_h, k_w = jax.random.split(key, 3)

    context = jax.random.normal(k_ctx, (B, S, DIM_CTX), dtype=jnp.float32)
    h = jax.random.normal(k_h, (B, DIM_H), dtype=jnp.float32)
    # linear_in = nn.Linear(dim_h, dim_ctx, bias=False) -> weight [dim_ctx, dim_h]
    w = jax.random.normal(k_w, (DIM_CTX, DIM_H), dtype=jnp.float32) * 0.1

    # --- f32 compute path: differs from the reference only by the EUP approx
    #     reciprocal (~1e-3 relative), hence the relaxed tolerance.
    wctx32, attn32 = soft_dot_attention(context, h, w,
                                        compute_dtype=jnp.float32)
    jax.block_until_ready((wctx32, attn32))
    wctx_ref, attn_ref = soft_dot_attention_ref(context, h, w)
    assert wctx32.shape == (B, 1, DIM_CTX) and attn32.shape == (B, S)
    assert jnp.allclose(attn32, attn_ref, atol=1e-2, rtol=1e-2)
    assert jnp.allclose(wctx32, wctx_ref, atol=1e-2, rtol=1e-2)

    # --- default bf16-streaming path: compare against the reference evaluated
    #     on bf16-cast inputs (isolates kernel error from the intentional cast).
    wctx_bf, attn_bf = soft_dot_attention(context, h, w)
    jax.block_until_ready((wctx_bf, attn_bf))
    cb = context.astype(jnp.bfloat16).astype(jnp.float32)
    hb = h.astype(jnp.bfloat16).astype(jnp.float32)
    wb = w.astype(jnp.bfloat16).astype(jnp.float32)
    wctx_refb, attn_refb = soft_dot_attention_ref(cb, hb, wb)
    assert wctx_bf.shape == (B, 1, DIM_CTX) and attn_bf.shape == (B, S)
    assert jnp.allclose(attn_bf, attn_refb, atol=1e-2, rtol=1e-2)
    assert jnp.allclose(wctx_bf, wctx_refb, atol=1e-2, rtol=1e-2)

    print("KERNEL_OK")
</pallas_src>

<mosaic_0001>
module attributes {stable_mosaic.version = 11 : i64} {
  func.func @_soft_dot_attention_kernel(%arg0: i32, %arg1: memref<2x8x64xf32, #tpu.memory_space<vmem>>, %arg2: memref<2x32xf32, #tpu.memory_space<vmem>>, %arg3: memref<64x32xf32, #tpu.memory_space<vmem>>, %arg4: memref<2x1x64xf32, #tpu.memory_space<vmem>>, %arg5: memref<2x8xf32, #tpu.memory_space<vmem>>) attributes {dimension_semantics = [#tpu.dimension_semantics<parallel>], iteration_bounds = array<i64: 1>, scalar_prefetch = 0 : i64, scratch_operands = 0 : i64, tpu.core_type = #tpu.core_type<tc>, window_params = [{transform_indices = @transform_0, window_bounds = array<i64: 2, 8, 64>}, {transform_indices = @transform_1, window_bounds = array<i64: 2, 32>}, {pipeline_mode = #tpu.pipeline_mode<synchronous>, transform_indices = @transform_2, window_bounds = array<i64: 64, 32>}, {transform_indices = @transform_3, window_bounds = array<i64: 2, 1, 64>}, {transform_indices = @transform_4, window_bounds = array<i64: 2, 8>}]} {
    %c0 = arith.constant 0 : index
    %c0_0 = arith.constant 0 : index
    %c0_1 = arith.constant 0 : index
    %0 = vector.load %arg1[%c0, %c0_0, %c0_1] : memref<2x8x64xf32, #tpu.memory_space<vmem>>, vector<2x8x64xf32>
    %c0_2 = arith.constant 0 : index
    %c0_3 = arith.constant 0 : index
    %1 = vector.load %arg2[%c0_2, %c0_3] : memref<2x32xf32, #tpu.memory_space<vmem>>, vector<2x32xf32>
    %c0_4 = arith.constant 0 : index
    %c0_5 = arith.constant 0 : index
    %2 = vector.load %arg3[%c0_4, %c0_5] : memref<64x32xf32, #tpu.memory_space<vmem>>, vector<64x32xf32>
    %cst = arith.constant dense<0.000000e+00> : vector<2x64xf32>
    %3 = tpu.matmul %1, %2, %cst {dimension_numbers = #tpu.dot_dimension_numbers<[1], [1], [0], [0], [0, 0, 1, 0], [], []>} : vector<2x32xf32>, vector<64x32xf32>, vector<2x64xf32> -> vector<2x64xf32>
    %4 = vector.shape_cast %3 : vector<2x64xf32> to vector<2x1x64xf32>
    %5 = vector.broadcast %4 : vector<2x1x64xf32> to vector<2x8x64xf32>
    %6 = arith.mulf %0, %5 : vector<2x8x64xf32>
    %cst_6 = arith.constant dense<0.000000e+00> : vector<2x8xf32>
    %7 = vector.multi_reduction <add>, %6, %cst_6 [2] : vector<2x8x64xf32> to vector<2x8xf32>
    %cst_7 = arith.constant dense<0xFF800000> : vector<2xf32>
    %8 = vector.multi_reduction <maximumf>, %7, %cst_7 [1] : vector<2x8xf32> to vector<2xf32>
    %9 = vector.shape_cast %8 : vector<2xf32> to vector<2x1xf32>
    %10 = vector.broadcast %9 : vector<2x1xf32> to vector<2x8xf32>
    %11 = arith.subf %7, %10 : vector<2x8xf32>
    %12 = math.exp %11 : vector<2x8xf32>
    %cst_8 = arith.constant dense<0.000000e+00> : vector<2xf32>
    %13 = vector.multi_reduction <add>, %12, %cst_8 [1] : vector<2x8xf32> to vector<2xf32>
    %14 = vector.shape_cast %13 : vector<2xf32> to vector<2x1xf32>
    %15 = tpu.reciprocal %14 {approx = true} : vector<2x1xf32> -> vector<2x1xf32>
    %16 = vector.broadcast %15 : vector<2x1xf32> to vector<2x8xf32>
    %17 = arith.mulf %12, %16 : vector<2x8xf32>
    %18 = vector.shape_cast %17 : vector<2x8xf32> to vector<2x8x1xf32>
    %19 = vector.broadcast %18 : vector<2x8x1xf32> to vector<2x8x64xf32>
    %20 = arith.mulf %19, %0 : vector<2x8x64xf32>
    %cst_9 = arith.constant dense<0.000000e+00> : vector<2x64xf32>
    %21 = vector.multi_reduction <add>, %20, %cst_9 [1] : vector<2x8x64xf32> to vector<2x64xf32>
    %c0_10 = arith.constant 0 : index
    %c0_11 = arith.constant 0 : index
    %22 = vector.load %arg5[%c0_10, %c0_11] : memref<2x8xf32, #tpu.memory_space<vmem>>, vector<2x8xf32>
    tpu.vector_store %arg5[%c0_10, %c0_11], %17 {strides = array<i32>} : memref<2x8xf32, #tpu.memory_space<vmem>>, vector<2x8xf32>,
    %23 = vector.shape_cast %21 : vector<2x64xf32> to vector<2x1x64xf32>
    %c0_12 = arith.constant 0 : index
    %c0_13 = arith.constant 0 : index
    %c0_14 = arith.constant 0 : index
    %24 = vector.load %arg4[%c0_12, %c0_13, %c0_14] : memref<2x1x64xf32, #tpu.memory_space<vmem>>, vector<2x1x64xf32>
    tpu.vector_store %arg4[%c0_12, %c0_13, %c0_14], %23 {strides = array<i32>} : memref<2x1x64xf32, #tpu.memory_space<vmem>>, vector<2x1x64xf32>,
    return
  }
  func.func @transform_0(%arg0: i32) -> (i32, i32, i32) {
    %c0_i32 = arith.constant 0 : i32
    %c0_i32_0 = arith.constant 0 : i32
    %c0_i32_1 = arith.constant 0 : i32
    return %arg0, %c0_i32, %c0_i32_0 : i32, i32, i32
  }
  func.func @transform_1(%arg0: i32) -> (i32, i32) {
    %c0_i32 = arith.constant 0 : i32
    %c0_i32_0 = arith.constant 0 : i32
    return %arg0, %c0_i32 : i32, i32
  }
  func.func @transform_2(%arg0: i32) -> (i32, i32) {
    %c0_i32 = arith.constant 0 : i32
    %c0_i32_0 = arith.constant 0 : i32
    %c0_i32_1 = arith.constant 0 : i32
    return %c0_i32, %c0_i32_0 : i32, i32
  }
  func.func @transform_3(%arg0: i32) -> (i32, i32, i32) {
    %c0_i32 = arith.constant 0 : i32
    %c0_i32_0 = arith.constant 0 : i32
    %c0_i32_1 = arith.constant 0 : i32
    return %arg0, %c0_i32, %c0_i32_0 : i32, i32, i32
  }
  func.func @transform_4(%arg0: i32) -> (i32, i32) {
    %c0_i32 = arith.constant 0 : i32
    %c0_i32_0 = arith.constant 0 : i32
    return %arg0, %c0_i32 : i32, i32
  }
}

</mosaic_0001>

<bundles_post_ra>
// kernel: tpu_custom_call.1
= control target key start
LH: loop header
LB: loop body
LE: loop exit
PB: predicated region body
PF: predicated region fallthrough
CT: control target
= control target key end

     0   :  { %10 = vsyncpa [#allocation3], 0  ;;  %vm29_vm0 = vcmask 261120   ;;  %v428_v2 = vmov 0.0|0.0   ;;  %vm429_vm2 = vmmov 0   ;;  %v430_v5 = vmov 0.0   ;;  %s544_s0 = inlined_call_operand.vmem [shape: f32[2,8,64], index: 0, kind: input, shape index: {}]   ;;  %s545_s1 = inlined_call_operand.vmem [shape: f32[2,32], index: 1, kind: input, shape index: {}]   ;;  %s546_s2 = inlined_call_operand.vmem [shape: f32[64,32], index: 2, kind: input, shape index: {}]   ;;  %s547_s3 = inlined_call_operand.hbm [shape: f32[2,1,64], index: 3, kind: output, shape index: {0}]   ;;  %s548_s4 = inlined_call_operand.hbm [shape: f32[2,8], index: 4, kind: output, shape index: {1}]  }
   0x1   :  { %v21_v0 = vld [vmem:[%s546_s2] sm:$0xff]  ;;  %v22_v1 = vld [vmem:[%s546_s2 + $0x8] sm:$0xff]  ;;  %347 = vmatprep.subr.bf16.mxu0 %v428_v2  ;;  %vm470_vm1 = vmpackc.low %vm29_vm0, %vm29_vm0  ;;  %344 = vmatprep.mubr.msk.f32.mxu0 %vm429_vm2, %v430_v5 }
   0x2   :  { %v348_v3 = vpack.c.bf16 %v22_v1, %v21_v0 }
   0x4   :  { %350 = vmatpush3.bf16.xpose.msk.msra.mxu0 %vm470_vm1, %v348_v3 }
   0x5   :  { %11 = vsyncpa [#allocation5], 0  ;;  %351 = vmatprep.subr.bf16.mxu0 %v428_v2  ;;  %v23_v6 = vld [vmem:[%s546_s2 + $0x10] sm:$0xff]  ;;  %v24_v7 = vld [vmem:[%s546_s2 + $0x18] sm:$0xff]  ;;  %v431_v16 = vmov 1966171168   ;;  %v131_v18 = vlaneseq }
   0x6   :  { %v352_v8 = vpack.c.bf16 %v24_v7, %v23_v6  ;;  %v25_v9 = vld [vmem:[%s546_s2 + $0x20] sm:$0xff]  ;;  %v26_v10 = vld [vmem:[%s546_s2 + $0x28] sm:$0xff]  ;;  %v27_v12 = vld [vmem:[%s546_s2 + $0x30] sm:$0xff]  ;;  %v129_v17 = vunpack.c.l.s4 %v431_v16  ;;  %vm162_vm3 = vcmask 523264   ;;  %vm181_vm4 = vcmask 1041409  }
   0x7   :  { %v356_v11 = vpack.c.bf16 %v26_v10, %v25_v9  ;;  %v28_v13 = vld [vmem:[%s546_s2 + $0x38] sm:$0xff]  ;;  %v20_v15 = vld [vmem:[%s545_s1] sm:$0x3]  ;;  %v132_v20 = vshrl.u32 %v131_v18, 7  ;;  %v19_v31 = vld [vmem:[%s544_s0 + $0x8] sm:$0xff]  ;;  %v172_v37 = vand.u32 127, %v131_v18 }
   0x8   :  { %v360_v14 = vpack.c.bf16 %v28_v13, %v27_v12  ;;  %v130_v19 = vunpack.c.0.s8 %v129_v17  ;;  %v18_v28 = vld [vmem:[%s544_s0] sm:$0xff]  ;;  %vm184_vm5 = vcmask 58368   ;;  %v432_v45 = vmov 0   ;;  %s433_s0 = smov [#allocation4]  }
   0x9   :  { %v152_v25 = vsub.s32 0, %v132_v20  ;;  %v175_v39 = vsub.s32 %v172_v37, %v132_v20  ;;  %373 = vset.pattern.permute.xlu0 %v432_v45  ;;  %372 = vset.pattern.permute.xlu1 %v432_v45  ;;  %v195_v46 = vsub.s32 1, %v132_v20  ;;  %s298_s9 = sshll.u32 %s433_s0, 4  ;;  %s299_s9 = int_to_ptr.vmem [resolvable:$true] %s298_s9 }
   0xa   :  { %v133_v21 = vsub.s32 %v130_v19, %v132_v20  ;;  %s380_s10 = scalar_lea.vmem %s299_s9, 32  ;;  %p385_p1 = scmp.lt.s32.totalorder %s299_s9, %s299_s9 }
   0xb   :  { %p381_p0 = scmp.ne.s32.totalorder %s299_s9, %s380_s10  ;;  %p386_p2 = scmp.lt.s32.totalorder %s380_s10, %s380_s10 }
   0xc   :  { %354 = vmatpush3.bf16.xpose.msk.msra.mxu0 %vm470_vm1, %v352_v8 }
   0xd   :  { %355 = vmatprep.subr.bf16.mxu0 %v428_v2  ;;  %p387_p3 = por %p386_p2, %p385_p1 }
   0xf   :  { %p388_p4 = pnand %p387_p3, %p381_p0 }
  0x14   :  { %358 = vmatpush3.bf16.xpose.msk.msra.mxu0 %vm470_vm1, %v356_v11 }
  0x15   :  { %359 = vmatprep.subr.bf16.mxu0 %v428_v2 }
  0x1c   :  { %362 = vmatpush3.bf16.xpose.msk.msra.mxu0 %vm470_vm1, %v360_v14 }
  0x23   :  { %345 = vmatmul.mubr.msk.f32.vlgmr.msra.gmra.mrb[0].mxu0 %vm29_vm0, %v20_v15 }
  0xf6   :  { %v123_v22 = vpop.f32.mrb[0].mxu0 }
  0xf7   :  { %v134_v23 = vrot.slane %v123_v22, %v133_v21  ;;  %v346_v24 = vpop.f32.mrb[1].mxu0 }
  0xf9   :  { %v135_v26 = vcombine.high %v134_v23, %v134_v23  ;;  %v142_v27 = vrot.slane %v134_v23, %v133_v21 }
  0xfb   :  { %v149_v29 = vrot.slane %v135_v26, %v133_v21  ;;  %v153_v30 = vrot.slane %v142_v27, %v152_v25 }
  0xfd   :  { %v160_v32 = vmul.f32 %v153_v30, %v18_v28  ;;  %v157_v33 = vrot.slane %v149_v29, %v152_v25 }
  0xff   :  { %v163_v34 = vsel %vm162_vm3, %v160_v32, 0.0  ;;  %v161_v35 = vmul.f32 %v157_v33, %v19_v31 }
 0x100   :  { %164 = vadd.xlane.f32.xlu0 %v163_v34 }
 0x101   :  { %v166_v36 = vsel %vm162_vm3, %v161_v35, 0.0 }
 0x104   :  { %167 = vadd.xlane.f32.xlu0 %v166_v36 }
 0x18d   :  { %v165_v38 = vpop.xlane.xlu0 %164 }
 0x18e   :  { %v176_v41 = vrot.slane %v165_v38, %v175_v39 }
 0x191   :  { %v168_v40 = vpop.xlane.xlu0 %167 }
 0x192   :  { %v180_v42 = vrot.slane %v168_v40, %v175_v39 }
 0x194   :  { %v182_v43 = vsel %vm181_vm4, %v180_v42, %v176_v41 }
 0x195   :  { %v185_v44 = vsel %vm184_vm5, %v182_v43, -inf }
 0x196   :  { %186 = vmax.xlane.f32.xlu1 %v185_v44 }
 0x223   :  { %v187_v47 = vpop.xlane.xlu1 %186 }
 0x224   :  { %v192_v48 = vrot.slane %v187_v47, %v152_v25  ;;  %v196_v49 = vrot.slane %v187_v47, %v195_v46 }
 0x226   :  { %v199_v50 = vsub.f32 %v165_v38, %v192_v48  ;;  %v200_v51 = vsub.f32 %v168_v40, %v196_v49 }
 0x228   :  { %v201_v52 = vmul.f32 1.442695, %v199_v50  ;;  %v203_v53 = vmul.f32 1.442695, %v200_v51 }
 0x22a   :  { %374 = vpow2.f32 %v201_v52 }
 0x22b   :  { %376 = vpow2.f32 %v203_v53 }
 0x234   :  { %v375_v54 = vpop.eup %374 }
 0x235   :  { %v377_v55 = vpop.eup %376  ;;  %208 = vperm.xlu1 %372, %v375_v54  }
 0x236   :  { %211 = vperm.xlu0 %373, %v377_v55  }
 0x2b4   :  { %v209_v56 = vpop.permute.xlu1 %208 }
 0x2b5   :  { %v212_v57 = vpop.permute.xlu0 %211  ;;  %v216_v58 = vrot.slane %v209_v56, %v175_v39 }
 0x2b6   :  { %v220_v59 = vrot.slane %v212_v57, %v175_v39 }
 0x2b8   :  { %v221_v60 = vsel %vm181_vm4, %v220_v59, %v216_v58 }
 0x2b9   :  { %v223_v61 = vsel %vm184_vm5, %v221_v60, 0.0 }
 0x2ba   :  { %224 = vadd.xlane.f32.xlu1 %v223_v61 }
 0x347   :  { %v225_v62 = vpop.xlane.xlu1 %224 }
 0x348   :  { %378 = vrcp.f32 %v225_v62 }
 0x352   :  { %v379_v63 = vpop.eup %378 }
 0x353   :  { %v231_v0 = vrot.slane %v379_v63, %v152_v25  ;;  %v235_v2 = vrot.slane %v379_v63, %v195_v46 }
 0x355   :  { %v238_v1 = vmul.f32 %v375_v54, %v231_v0  ;;  %v239_v3 = vmul.f32 %v377_v55, %v235_v2 }
 0x357   :  { %242 = vperm.xlu0 %373, %v238_v1  }
 0x35b   :  { %247 = vperm.xlu0 %373, %v239_v3  }
 0x3d6   :  { %v243_v4 = vpop.permute.xlu0 %242 }
 0x3d7   :  { %v250_v5 = vmul.f32 %v243_v4, %v18_v28  ;;  %v269_v9 = vrot.slane %v243_v4, %v175_v39 }
 0x3d9   :  { %v252_v6 = vsel %vm162_vm3, %v250_v5, 0.0 }
 0x3da   :  { %v253_v7 = vrot.slane %v252_v6, 4  ;;  %v248_v8 = vpop.permute.xlu0 %247 }
 0x3db   :  { %v251_v10 = vmul.f32 %v248_v8, %v19_v31  ;;  %v273_v11 = vrot.slane %v248_v8, %v175_v39 }
 0x3dc   :  { %v254_v12 = vadd.f32 %v253_v7, %v252_v6 }
 0x3dd   :  { %v259_v13 = vsel %vm162_vm3, %v251_v10, 0.0  ;;  %v274_v14 = vsel %vm181_vm4, %v273_v11, %v269_v9 }
 0x3de   :  { %v255_v15 = vrot.slane %v254_v12, 2  ;;  %v260_v16 = vrot.slane %v259_v13, 4  ;;  %276 = vst.msk [vmem:[#allocation4] sm:$0x3] %vm184_vm5, %v274_v14 }
 0x3df   :  { %391 = shalt.err (!%p388_p4)
}
 0x3e0   :  { %s392_s13 = scalar_lea.hbm %s548_s4, 32 }
 0x3e1   :  { %p393_p5 = scmp.ne.s32.totalorder %s548_s4, %s392_s13  ;;  %p396_p6 = scmp.lt.u32.totalorder %s392_s13, %s548_s4 }
 0x3e3   :  { %p398_p7 = pnand %p396_p6, %p393_p5 }
 0x3e5   :  { %401 = shalt.err (!%p398_p7)
}
 0x3e6   :  { %301 = dma.vmem_to_hbm [thread:$0]  %s299_s9, 32, %s548_s4, [#allocation5]   ;;  %v256_v17 = vadd.f32 %v255_v15, %v254_v12  ;;  %v261_v18 = vadd.f32 %v260_v16, %v259_v13  ;;  %vm277_vm6 = vcmask 516096  }
 0x3e7   :  { %s434_s20 = smov [#allocation2]  }
 0x3e8   :  { %v257_v19 = vrot.slane %v256_v17, 1  ;;  %v262_v20 = vrot.slane %v261_v18, 2  ;;  %s285_s21 = sshll.u32 %s434_s20, 4  ;;  %s286_s21 = int_to_ptr.vmem [resolvable:$true] %s285_s21 }
 0x3e9   :  { %s402_s22 = scalar_lea.vmem %s286_s21, 32  ;;  %p407_p9 = scmp.lt.s32.totalorder %s286_s21, %s286_s21 }
 0x3ea   :  { %v263_v21 = vadd.f32 %v262_v20, %v261_v18  ;;  %v258_v22 = vadd.f32 %v257_v19, %v256_v17  ;;  %p403_p8 = scmp.ne.s32.totalorder %s286_s21, %s402_s22  ;;  %p408_p10 = scmp.lt.s32.totalorder %s402_s22, %s402_s22 }
 0x3ec   :  { %v264_v23 = vrot.slane %v263_v21, 1  ;;  %278 = vst.msk [vmem:[#allocation2] sm:$0x1] %vm277_vm6, %v258_v22  ;;  %p409_p11 = por %p408_p10, %p407_p9 }
 0x3ee   :  { %v265_v24 = vadd.f32 %v264_v23, %v263_v21  ;;  %p410_p12 = pnand %p409_p11, %p403_p8 }
 0x3f0   :  { %279 = vst.msk [vmem:[#allocation2 + $0x1] sm:$0x1] %vm277_vm6, %v265_v24 }
 0x3f1   :  { %413 = shalt.err (!%p410_p12)
}
 0x3f2   :  { %s414_s24 = scalar_lea.hbm %s547_s3, 32 }
 0x3f3   :  { %p415_p13 = scmp.ne.s32.totalorder %s547_s3, %s414_s24  ;;  %p418_p0 = scmp.lt.u32.totalorder %s414_s24, %s547_s3 }
 0x3f5   :  { %p420_p1 = pnand %p418_p0, %p415_p13 }
 0x3f7   :  { %423 = shalt.err (!%p420_p1)
}
 0x3f8   :  { %s435_s29 = smov 16   ;;  %s436_s30 = smov 1  }
 0x3f9   :  { %291 = dma.vmem_to_hbm [thread:$0]  %s286_s21, 32, %s547_s3, [#allocation3], %s435_s29, %s435_s29, %s436_s30  }
 0x3fa   :  { %424 = dma.done.wait [#allocation3], 32  }
 0x3fb   :  { %425 = vsyncadd [#allocation3], 4294967264 }
 0x3fc   :  { %426 = dma.done.wait [#allocation5], 32  }
 0x3fd   :  { %427 = vsyncadd [#allocation5], 4294967264 }
 0x3fe   :  { %308 = vsyncpa [#allocation3], 1 }
 0x3ff   :  { %309 = vsyncpa [#allocation5], 1 }

</bundles_post_ra>
